<compile_context>
chip_gen: v7x
topology: tpu7x:2x2x1
jax: 0.10.0
libtpu: 0.0.40
codegen_flags: <defaults>
</compile_context>

<pallas_src>
import math
from functools import partial

import jax
import jax.numpy as jnp
from jax.experimental import pallas as pl
from jax.experimental.pallas import tpu as pltpu  # noqa: F401  (defaults suffice for this tiny kernel)


LB = 128  # lane-block size (one vreg width)


# ------------------------------ fused Pallas kernel ------------------------------

def _fused_mha_kernel(x_ref, w_ref, o_ref, *, D, NP):
    """Fused forward: QKV proj -> per-head (X X^T / sqrt(hd)) @ X -> out proj + residual.

    Per head h, X_h stacks rows (q_h, k_h, v_h).  The per-head Gram matrix is
    computed lane-parallel across all heads at once:  (r_i * r_j) @ ms gives
    G_h[i, j] replicated over head h's lanes (ms is block-diagonal with the
    1/sqrt(head_dim) scale baked in).  The torch flat reshape of the 4-D
    (B, H, 3S, hd) output into (B, 3S, D) and the residual broadcast are folded
    into the precomputed wout slab at init.
    """
    f32 = jnp.float32
    x = x_ref[...]                                               # (1, D)

    # --- (1) QKV projections + residual passthrough: ONE MXU matmul -------------
    wqkv = w_ref[pl.ds(0, D), :]                                 # (D, 4*LB)
    qkv = jnp.dot(x, wqkv, preferred_element_type=f32)           # (1, 4*LB)
    q = qkv[:, 0 * LB:1 * LB]                                    # lanes >= D are 0
    k = qkv[:, 1 * LB:2 * LB]
    v = qkv[:, 2 * LB:3 * LB]
    xi = qkv[:, 3 * LB:4 * LB]                                   # padded copy of x

    # --- (2) all six per-head Gram entries: ONE MXU matmul ----------------------
    glhs = jnp.concatenate([q * q, q * k, q * v, k * k, k * v, v * v], axis=0)  # (6, LB)
    ms = w_ref[pl.ds(D, LB), pl.ds(0, LB)]                       # (LB, LB)
    g = jnp.dot(glhs, ms, preferred_element_type=f32)            # (6, LB)
    gqq = g[0:1, :]
    gqk = g[1:2, :]
    gqv = g[2:3, :]
    gkk = g[3:4, :]
    gkv = g[4:5, :]
    gvv = g[5:6, :]

    # --- (3) O_h = G_h @ X_h, lane-parallel over heads (VPU only) ---------------
    o_q = gqq * q + gqk * k + gqv * v
    o_k = gqk * q + gkk * k + gkv * v
    o_v = gqv * q + gkv * k + gvv * v

    # TODO(synk): torch also computes softmax(qk) followed by dropout, but that
    # result is never used for the returned output, so it is omitted here.

    # --- (4) output projection + flat reshape + residual: ONE MXU matmul --------
    lhs = jnp.concatenate([o_q, o_k, o_v, xi], axis=1)           # (1, 4*LB)
    wout = w_ref[pl.ds(D + LB, 4 * LB), pl.ds(0, NP)]            # (4*LB, NP)
    o_ref[...] = jnp.dot(lhs, wout, preferred_element_type=f32)  # (1, NP), lane-dense


# --------------------------------- parameters ---------------------------------

def init_params(key, model_dim):
    """PyTorch nn.Linear(bias=False)-style init: U(-1/sqrt(in), 1/sqrt(in))."""
    ks = jax.random.split(key, 4)
    bound = 1.0 / math.sqrt(model_dim)

    def init(k):
        return jax.random.uniform(k, (model_dim, model_dim), jnp.float32,
                                  -bound, bound)

    return {"wq": init(ks[0]), "wk": init(ks[1]),
            "wv": init(ks[2]), "wo": init(ks[3])}


def prepare_fused_weights(params, num_heads):
    """One-time preprocessing hoisted out of the forward pass.

    Builds a SINGLE constant slab (688, 512) that lets the fused kernel express
    all the torch reshape / concat / flat-reshape / residual-broadcast plumbing
    as exactly three 2-D matmuls:
        rows [0,   D)        : wqkv  = [Wq^T | Wk^T | Wv^T | I] at 128-lane offsets
        rows [D,   D+128)    : ms    = block-diag within-head sum / sqrt(hd)
        rows [D+128, D+640)  : wout  = [w0p; w1p; w2p; rtile] at 128-row offsets
    """
    f32 = jnp.float32
    D = params["wq"].shape[0]
    H = num_heads
    hd = D // H
    S = 1                        # the torch forward is only shape-consistent for S == 1
    assert H * hd == D and hd == 3 * S
    rows = 3 * S                 # rows of the reshaped attention output
    P = rows * D                 # flattened final output length (144)
    NP = ((P + LB - 1) // LB) * LB          # lane-dense padded output width (256)
    N_QKV = 4 * LB               # q | k | v | x   lane blocks
    K_OUT = 4 * LB               # o_q | o_k | o_v | x   K blocks

    wq_t = params["wq"].T.astype(f32)
    wk_t = params["wk"].T.astype(f32)
    wv_t = params["wv"].T.astype(f32)
    wo_t = params["wo"].T.astype(f32)
    eye = jnp.eye(D, dtype=f32)

    # Fused QKV (+ residual passthrough) RHS.
    wqkv = jnp.zeros((D, N_QKV), f32)
    wqkv = wqkv.at[:, 0 * LB:0 * LB + D].set(wq_t)
    wqkv = wqkv.at[:, 1 * LB:1 * LB + D].set(wk_t)
    wqkv = wqkv.at[:, 2 * LB:2 * LB + D].set(wv_t)
    wqkv = wqkv.at[:, 3 * LB:3 * LB + D].set(eye)

    # Block-diagonal within-head summation, pre-scaled by 1/sqrt(head_dim).
    lane = jnp.arange(D)
    ms = ((lane[:, None] // hd) == (lane[None, :] // hd)).astype(f32) / math.sqrt(hd)
    ms_pad = jnp.zeros((LB, LB), f32).at[:D, :D].set(ms)

    # Folded output-projection blocks (torch flat reshape absorbed) + residual tile.
    c = jnp.arange(D)[:, None]          # lane index of an O row:  c = hd*h + d
    p = jnp.arange(P)[None, :]          # flattened output index:  p = D*m + n
    h = c // hd
    d = c % hd
    m = p // D
    n = p % D

    def make_wt(t):
        # flat index into the 4-D torch output (B, H, 3S, hd), B = 1
        j = h * (rows * hd) + t * hd + d
        row = j - m * D
        valid = (row >= 0) & (row < D)
        gathered = wo_t[jnp.clip(row, 0, D - 1), n]
        return jnp.where(valid, gathered, 0.0).astype(f32)

    rtile = (jnp.arange(D)[:, None] == n).astype(f32)   # residual broadcast [I|I|I]

    wout = jnp.zeros((K_OUT, NP), f32)
    wout = wout.at[0 * LB:0 * LB + D, :P].set(make_wt(0))
    wout = wout.at[1 * LB:1 * LB + D, :P].set(make_wt(1))
    wout = wout.at[2 * LB:2 * LB + D, :P].set(make_wt(2))
    wout = wout.at[3 * LB:3 * LB + D, :P].set(rtile)

    # Single pre-padded weight slab: one HBM->VMEM DMA instead of eight.
    slab = jnp.zeros((D + LB + K_OUT, N_QKV), f32)
    slab = slab.at[0:D, :].set(wqkv)
    slab = slab.at[D:D + LB, :LB].set(ms_pad)
    slab = slab.at[D + LB:D + LB + K_OUT, :NP].set(wout)
    return slab


# --------------------------------- forward pass ---------------------------------

@jax.jit
def multi_head_attention(x, slab):
    B, S, D = x.shape
    assert B == 1 and S == 1, "torch forward requires B == 1, S == 1"
    P = 3 * S * D
    NP = ((P + LB - 1) // LB) * LB
    x2d = x.reshape(B * S, D)                                    # (1, D), free
    out_pad = pl.pallas_call(
        partial(_fused_mha_kernel, D=D, NP=NP),
        out_shape=jax.ShapeDtypeStruct((B * S, NP), jnp.float32),
    )(x2d, slab)
    return out_pad[:, :P].reshape(B, 3 * S, D)


# ------------------------------ pure-JAX reference ------------------------------

def reference(x, params, num_heads):
    B, S, D = x.shape
    H = num_heads
    hd = D // H
    with jax.default_matmul_precision("highest"):
        q = x @ params["wq"].T
        k = x @ params["wk"].T
        v = x @ params["wv"].T
        input_x = jnp.concatenate(
            [q.reshape(B, H, -1), k.reshape(B, H, -1), v.reshape(B, H, -1)],
            axis=-1).reshape(B * H, -1, hd)
        qk = jnp.matmul(input_x, jnp.swapaxes(input_x, -2, -1)) / math.sqrt(hd)
        qk = qk.reshape(B, H, -1, input_x.shape[-1])
        output = jnp.matmul(qk, input_x)            # 4-D result
        output = output.reshape(B, -1, hd * H)
        output = output @ params["wo"].T
        return output + x


# ----------------------------------- main -----------------------------------

if __name__ == "__main__":
    key = jax.random.PRNGKey(0)
    kx, kp = jax.random.split(key)

    # Shapes the PyTorch forward actually supports (see header comment).
    B, S, H = 1, 1, 16
    D = 3 * H                       # model_dim = 48, head_dim = 3

    x = jax.random.normal(kx, (B, S, D), dtype=jnp.float32)
    params = init_params(kp, D)
    slab = prepare_fused_weights(params, H)         # one-time preprocessing

    out = multi_head_attention(x, slab)
    out = jax.block_until_ready(out)

    ref = reference(x, params, H)
    max_err = float(jnp.max(jnp.abs(out - ref)))
    scale = max(1.0, float(jnp.max(jnp.abs(ref))))
    if not (out.shape == (B, 3 * S, D) and max_err <= 1e-2 * scale):
        raise ValueError(f"mismatch vs reference: shape={out.shape}, max_err={max_err}")

    print("KERNEL_OK")
</pallas_src>

<mosaic_0001>
module attributes {stable_mosaic.version = 11 : i64} {
  func.func @_fused_mha_kernel(%arg0: memref<1x48xf32, #tpu.memory_space<vmem>>, %arg1: memref<688x512xf32, #tpu.memory_space<vmem>>, %arg2: memref<1x256xf32, #tpu.memory_space<vmem>>) attributes {dimension_semantics = [], scalar_prefetch = 0 : i64, scratch_operands = 0 : i64, tpu.core_type = #tpu.core_type<tc>} {
    %c0 = arith.constant 0 : index
    %c0_0 = arith.constant 0 : index
    %0 = vector.load %arg0[%c0, %c0_0] : memref<1x48xf32, #tpu.memory_space<vmem>>, vector<1x48xf32>
    %c0_1 = arith.constant 0 : index
    %c0_2 = arith.constant 0 : index
    %1 = vector.load %arg1[%c0_1, %c0_2] : memref<688x512xf32, #tpu.memory_space<vmem>>, vector<48x512xf32>
    %cst = arith.constant dense<0.000000e+00> : vector<1x512xf32>
    %2 = tpu.matmul %0, %1, %cst {dimension_numbers = #tpu.dot_dimension_numbers<[1], [0], [0], [1], [0, 0, 1, 1], [], []>} : vector<1x48xf32>, vector<48x512xf32>, vector<1x512xf32> -> vector<1x512xf32>
    %3 = vector.extract_strided_slice %2 {offsets = [0, 0], sizes = [1, 128], strides = [1, 1]} : vector<1x512xf32> to vector<1x128xf32>
    %4 = vector.extract_strided_slice %2 {offsets = [0, 128], sizes = [1, 128], strides = [1, 1]} : vector<1x512xf32> to vector<1x128xf32>
    %5 = vector.extract_strided_slice %2 {offsets = [0, 256], sizes = [1, 128], strides = [1, 1]} : vector<1x512xf32> to vector<1x128xf32>
    %6 = vector.extract_strided_slice %2 {offsets = [0, 384], sizes = [1, 128], strides = [1, 1]} : vector<1x512xf32> to vector<1x128xf32>
    %7 = arith.mulf %3, %3 : vector<1x128xf32>
    %8 = arith.mulf %3, %4 : vector<1x128xf32>
    %9 = arith.mulf %3, %5 : vector<1x128xf32>
    %10 = arith.mulf %4, %4 : vector<1x128xf32>
    %11 = arith.mulf %4, %5 : vector<1x128xf32>
    %12 = arith.mulf %5, %5 : vector<1x128xf32>
    %13 = tpu.concatenate %7, %8, %9, %10, %11, %12 in 0 : vector<1x128xf32>, vector<1x128xf32>, vector<1x128xf32>, vector<1x128xf32>, vector<1x128xf32>, vector<1x128xf32> -> vector<6x128xf32>
    %c48 = arith.constant 48 : index
    %c0_3 = arith.constant 0 : index
    %14 = vector.load %arg1[%c48, %c0_3] : memref<688x512xf32, #tpu.memory_space<vmem>>, vector<128x128xf32>
    %cst_4 = arith.constant dense<0.000000e+00> : vector<6x128xf32>
    %15 = tpu.matmul %13, %14, %cst_4 {dimension_numbers = #tpu.dot_dimension_numbers<[1], [0], [0], [1], [0, 0, 1, 1], [], []>} : vector<6x128xf32>, vector<128x128xf32>, vector<6x128xf32> -> vector<6x128xf32>
    %16 = vector.extract_strided_slice %15 {offsets = [0, 0], sizes = [1, 128], strides = [1, 1]} : vector<6x128xf32> to vector<1x128xf32>
    %17 = vector.extract_strided_slice %15 {offsets = [1, 0], sizes = [1, 128], strides = [1, 1]} : vector<6x128xf32> to vector<1x128xf32>
    %18 = vector.extract_strided_slice %15 {offsets = [2, 0], sizes = [1, 128], strides = [1, 1]} : vector<6x128xf32> to vector<1x128xf32>
    %19 = vector.extract_strided_slice %15 {offsets = [3, 0], sizes = [1, 128], strides = [1, 1]} : vector<6x128xf32> to vector<1x128xf32>
    %20 = vector.extract_strided_slice %15 {offsets = [4, 0], sizes = [1, 128], strides = [1, 1]} : vector<6x128xf32> to vector<1x128xf32>
    %21 = vector.extract_strided_slice %15 {offsets = [5, 0], sizes = [1, 128], strides = [1, 1]} : vector<6x128xf32> to vector<1x128xf32>
    %22 = arith.mulf %16, %3 : vector<1x128xf32>
    %23 = arith.mulf %17, %4 : vector<1x128xf32>
    %24 = arith.addf %22, %23 : vector<1x128xf32>
    %25 = arith.mulf %18, %5 : vector<1x128xf32>
    %26 = arith.addf %24, %25 : vector<1x128xf32>
    %27 = arith.mulf %17, %3 : vector<1x128xf32>
    %28 = arith.mulf %19, %4 : vector<1x128xf32>
    %29 = arith.addf %27, %28 : vector<1x128xf32>
    %30 = arith.mulf %20, %5 : vector<1x128xf32>
    %31 = arith.addf %29, %30 : vector<1x128xf32>
    %32 = arith.mulf %18, %3 : vector<1x128xf32>
    %33 = arith.mulf %20, %4 : vector<1x128xf32>
    %34 = arith.addf %32, %33 : vector<1x128xf32>
    %35 = arith.mulf %21, %5 : vector<1x128xf32>
    %36 = arith.addf %34, %35 : vector<1x128xf32>
    %37 = tpu.concatenate %26, %31, %36, %6 in 1 : vector<1x128xf32>, vector<1x128xf32>, vector<1x128xf32>, vector<1x128xf32> -> vector<1x512xf32>
    %c176 = arith.constant 176 : index
    %c0_5 = arith.constant 0 : index
    %38 = vector.load %arg1[%c176, %c0_5] : memref<688x512xf32, #tpu.memory_space<vmem>>, vector<512x256xf32>
    %cst_6 = arith.constant dense<0.000000e+00> : vector<1x256xf32>
    %39 = tpu.matmul %37, %38, %cst_6 {dimension_numbers = #tpu.dot_dimension_numbers<[1], [0], [0], [1], [0, 0, 1, 1], [], []>} : vector<1x512xf32>, vector<512x256xf32>, vector<1x256xf32> -> vector<1x256xf32>
    %c0_7 = arith.constant 0 : index
    %c0_8 = arith.constant 0 : index
    %40 = vector.load %arg2[%c0_7, %c0_8] : memref<1x256xf32, #tpu.memory_space<vmem>>, vector<1x256xf32>
    tpu.vector_store %arg2[%c0_7, %c0_8], %39 {strides = array<i32>} : memref<1x256xf32, #tpu.memory_space<vmem>>, vector<1x256xf32>,
    return
  }
}

</mosaic_0001>

<bundles_post_ra>
// kernel: multi_head_attention.1
= control target key start
LH: loop header
LB: loop body
LE: loop exit
PB: predicated region body
PF: predicated region fallthrough
CT: control target
= control target key end

     0   :  { %7 = vsyncpa [#allocation3], 0  ;;  %s1067_s0 = inlined_call_operand.hbm [shape: f32[1,48], index: 0, kind: input, shape index: {}]   ;;  %s1068_s1 = inlined_call_operand.hbm [shape: f32[688,512], index: 1, kind: input, shape index: {}]   ;;  %s1069_s2 = inlined_call_operand.vmem [shape: f32[1,256], index: 2, kind: output, shape index: {}]  }
   0x1   :  { %8 = vsyncpa [#allocation5], 0  ;;  %s970_s9 = smov [#allocation2]   ;;  %s971_s11 = smov [#allocation4]  }
   0x2   :  { %s15_s10 = sshll.u32 %s970_s9, 4  ;;  %s24_s12 = sshll.u32 %s971_s11, 4  ;;  %s16_s10 = int_to_ptr.vmem [resolvable:$true] %s15_s10  ;;  %s993_s12 = int_to_ptr.vmem [resolvable:$true] %s24_s12 }
   0x3   :  { %s922_s15 = scalar_lea.hbm %s1067_s0, 16 }
   0x4   :  { %p923_p0 = scmp.ne.s32.totalorder %s1067_s0, %s922_s15  ;;  %p926_p1 = scmp.lt.u32.totalorder %s922_s15, %s1067_s0 }
   0x6   :  { %p928_p2 = pnand %p926_p1, %p923_p0 }
   0x8   :  { %931 = shalt.err (!%p928_p2)
}
   0x9   :  { %s932_s20 = scalar_lea.vmem %s16_s10, 16  ;;  %s936_s21 = scalar_lea.vmem %s16_s10, 32 }
   0xa   :  { %p933_p3 = scmp.ne.s32.totalorder %s16_s10, %s932_s20  ;;  %p937_p4 = scmp.lt.s32.totalorder %s16_s10, %s16_s10 }
   0xb   :  { %p938_p5 = scmp.lt.s32.totalorder %s936_s21, %s932_s20 }
   0xd   :  { %p939_p6 = por %p938_p5, %p937_p4 }
   0xf   :  { %p940_p7 = pnand %p939_p6, %p933_p3 }
  0x11   :  { %943 = shalt.err (!%p940_p7)
}
  0x12   :  { %18 = dma.hbm_to_vmem [thread:$0]  %s1067_s0, 16, %s16_s10, [#allocation3]  }
  0x13   :  { %s944_s26 = scalar_lea.hbm %s1068_s1, 44032 }
  0x14   :  { %p945_p8 = scmp.ne.s32.totalorder %s1068_s1, %s944_s26  ;;  %p948_p9 = scmp.lt.u32.totalorder %s944_s26, %s1068_s1 }
  0x16   :  { %p950_p10 = pnand %p948_p9, %p945_p8 }
  0x18   :  { %953 = shalt.err (!%p950_p10)
}
  0x19   :  { %s954_s3 = scalar_lea.vmem %s993_s12, 44032  ;;  %p959_p12 = scmp.lt.s32.totalorder %s993_s12, %s993_s12 }
  0x1a   :  { %p955_p11 = scmp.ne.s32.totalorder %s993_s12, %s954_s3  ;;  %p960_p13 = scmp.lt.s32.totalorder %s954_s3, %s954_s3 }
  0x1c   :  { %p961_p0 = por %p960_p13, %p959_p12 }
  0x1e   :  { %p962_p1 = pnand %p961_p0, %p955_p11 }
  0x20   :  { %965 = shalt.err (!%p962_p1)
}
  0x21   :  { %s972_s0 = smov 512   ;;  %s973_s4 = smov 32  }
  0x22   :  { %30 = dma.hbm_to_vmem [thread:$0]  %s1068_s1, 44032, %s993_s12, [#allocation5], %s972_s0, %s972_s0, %s973_s4  }
  0x23   :  { %966 = dma.done.wait [#allocation3], 16  }
  0x24   :  { %967 = vsyncadd [#allocation3], 4294967280 }
  0x25   :  { %968 = dma.done.wait [#allocation5], 44032  }
  0x26   :  { %969 = vsyncadd [#allocation5], 4294923264  ;;  %v974_v0 = vmov 0.0   ;;  %v975_v1 = vmov 0.0|0.0   ;;  %v39_v2 = vld [vmem:[#allocation4 + $0x8] sm:$0xff]  ;;  %v38_v4 = vld [vmem:[#allocation4] sm:$0xff] }
  0x27   :  { %130 = vmatprep.mubr.f32.mxu1 %v974_v0  ;;  %760 = vmatprep.subr.bf16.mxu0 %v975_v1  ;;  %v43_v3 = vld [vmem:[#allocation4 + $0x28] sm:$0xff]  ;;  %v42_v6 = vld [vmem:[#allocation4 + $0x20] sm:$0xff]  ;;  %v41_v19 = vld [vmem:[#allocation4 + $0x18] sm:$0xff]  ;;  %vm62_vm0 = vcmask 392192   ;;  %vm976_vm1 = vmmov 0   ;;  %vm229_vm2 = vcmask 1040384  }
  0x28   :  { %v736_v5 = vpack.c.bf16 %v43_v3, %v39_v2  ;;  %v47_v7 = vld [vmem:[#allocation4 + $0x48] sm:$0xff]  ;;  %v738_v9 = vpack.c.bf16 %v42_v6, %v38_v4  ;;  %v46_v11 = vld [vmem:[#allocation4 + $0x40] sm:$0xff]  ;;  %v45_v20 = vld [vmem:[#allocation4 + $0x38] sm:$0xff]  ;;  %733 = vmatprep.mubr.msk.f32.mxu0 %vm976_vm1, %v974_v0  ;;  %vm231_vm3 = vcmask 1041408   ;;  %vm233_vm4 = vcmask 1042432  }
  0x29   :  { %v51_v8 = vld [vmem:[#allocation4 + $0x68] sm:$0xff]  ;;  %v50_v12 = vld [vmem:[#allocation4 + $0x60] sm:$0xff]  ;;  %v40_v22 = vld [vmem:[#allocation4 + $0x10] sm:$0xff]  ;;  %v748_v25 = vpack.c.bf16 %v45_v20, %v41_v19  ;;  %vm235_vm5 = vcmask 1043456   ;;  %vm237_vm6 = vcmask 1044480  }
  0x2a   :  { %v740_v10 = vpack.c.bf16 %v51_v8, %v47_v7  ;;  %v55_v13 = vld [vmem:[#allocation4 + $0x88] sm:$0xff]  ;;  %737 = vmatprep.subr.bf16.mxu1 %v736_v5  ;;  %v742_v15 = vpack.c.bf16 %v50_v12, %v46_v11  ;;  %v54_v17 = vld [vmem:[#allocation4 + $0x80] sm:$0xff]  ;;  %v44_v26 = vld [vmem:[#allocation4 + $0x30] sm:$0xff] }
  0x2b   :  { %v59_v14 = vld [vmem:[#allocation4 + $0xa8] sm:$0xff]  ;;  %739 = vmatpush1.bf16.msra.mxu1 %v738_v9  ;;  %v58_v18 = vld [vmem:[#allocation4 + $0xa0] sm:$0xff]  ;;  %v49_v30 = vld [vmem:[#allocation4 + $0x58] sm:$0xff]  ;;  %v750_v34 = vpack.c.bf16 %v44_v26, %v40_v22 }
  0x2c   :  { %741 = vmatprep.subr.bf16.mxu1 %v740_v10  ;;  %v744_v16 = vpack.c.bf16 %v59_v14, %v55_v13  ;;  %v746_v21 = vpack.c.bf16 %v58_v18, %v54_v17  ;;  %v239_v23 = vld [vmem:[#allocation4 + $0xc0] sm:$0xff]  ;;  %v53_v31 = vld [vmem:[#allocation4 + $0x78] sm:$0xff]  ;;  %v48_v38 = vld [vmem:[#allocation4 + $0x50] sm:$0xff] }
  0x2d   :  { %v240_v24 = vld [vmem:[#allocation4 + $0xe0] sm:$0xff]  ;;  %v37_v33 = vld [vmem:[#allocation2] sm:$0x1]  ;;  %v752_v37 = vpack.c.bf16 %v53_v31, %v49_v30  ;;  %v52_v39 = vld [vmem:[#allocation4 + $0x70] sm:$0xff] }
  0x2e   :  { %v761_v27 = vpack.c.bf16 %v240_v24, %v239_v23  ;;  %v241_v28 = vld [vmem:[#allocation4 + $0x100] sm:$0xff]  ;;  %v57_v40 = vld [vmem:[#allocation4 + $0x98] sm:$0xff]  ;;  %v754_v43 = vpack.c.bf16 %v52_v39, %v48_v38  ;;  %v56_v45 = vld [vmem:[#allocation4 + $0x90] sm:$0xff] }
  0x2f   :  { %743 = vmatpush1.bf16.msra.mxu1 %v742_v15  ;;  %v242_v29 = vld [vmem:[#allocation4 + $0x120] sm:$0xff]  ;;  %v61_v41 = vld [vmem:[#allocation4 + $0xb8] sm:$0xff]  ;;  %v60_v46 = vld [vmem:[#allocation4 + $0xb0] sm:$0xff] }
  0x30   :  { %745 = vmatprep.subr.bf16.mxu1 %v744_v16  ;;  %762 = vmatpush3.bf16.msra.mxu0 %v761_v27  ;;  %v764_v32 = vpack.c.bf16 %v242_v29, %v241_v28  ;;  %v243_v35 = vld [vmem:[#allocation4 + $0x140] sm:$0xff]  ;;  %v756_v44 = vpack.c.bf16 %v61_v41, %v57_v40  ;;  %v758_v47 = vpack.c.bf16 %v60_v46, %v56_v45  ;;  %v448_v63 = vld [vmem:[#allocation4 + $0x6c8] sm:$0xff] }
  0x31   :  { %763 = vmatprep.subr.bf16.mxu0 %v975_v1  ;;  %v244_v36 = vld [vmem:[#allocation4 + $0x160] sm:$0xff]  ;;  %v450_v2 = vld [vmem:[#allocation4 + $0x6e8] sm:$0xff] }
  0x32   :  { %v767_v42 = vpack.c.bf16 %v244_v36, %v243_v35  ;;  %v245_v48 = vld [vmem:[#allocation4 + $0x180] sm:$0xff]  ;;  %v384_v3 = vld [vmem:[#allocation4 + $0x2c8] sm:$0xff]  ;;  %v848_v4 = vpack.c.bf16 %v450_v2, %v448_v63 }
  0x33   :  { %747 = vmatpush1.bf16.msra.mxu1 %v746_v21  ;;  %v246_v49 = vld [vmem:[#allocation4 + $0x1a0] sm:$0xff]  ;;  %v386_v5 = vld [vmem:[#allocation4 + $0x2e8] sm:$0xff] }
  0x34   :  { %749 = vmatprep.subr.bf16.mxu1 %v748_v25  ;;  %765 = vmatpush3.bf16.msra.mxu0 %v764_v32  ;;  %v770_v50 = vpack.c.bf16 %v246_v49, %v245_v48  ;;  %v247_v51 = vld [vmem:[#allocation4 + $0x1c0] sm:$0xff]  ;;  %v784_v8 = vpack.c.bf16 %v386_v5, %v384_v3  ;;  %v452_v10 = vld [vmem:[#allocation4 + $0x708] sm:$0xff] }
  0x35   :  { %766 = vmatprep.subr.bf16.mxu0 %v975_v1  ;;  %v248_v52 = vld [vmem:[#allocation4 + $0x1e0] sm:$0xff]  ;;  %v454_v11 = vld [vmem:[#allocation4 + $0x728] sm:$0xff] }
  0x36   :  { %682 = vmatmul.mubr.msk.f32.vlgmr.msra.gmra.mrb[0].mxu1 %vm62_vm0, %v37_v33  ;;  %v773_v53 = vpack.c.bf16 %v248_v52, %v247_v51  ;;  %v249_v54 = vld [vmem:[#allocation4 + $0x200] sm:$0xff]  ;;  %v458_v15 = vld [vmem:[#allocation4 + $0x768] sm:$0xff] }
  0x37   :  { %751 = vmatpush1.bf16.msra.mxu1 %v750_v34  ;;  %201 = vmatprep.mubr.f32.mxu1 %v974_v0  ;;  %v250_v55 = vld [vmem:[#allocation4 + $0x220] sm:$0xff]  ;;  %v456_v0 = vld [vmem:[#allocation4 + $0x748] sm:$0xff] }
  0x38   :  { %753 = vmatprep.subr.bf16.mxu1 %v752_v37  ;;  %768 = vmatpush3.bf16.msra.mxu0 %v767_v42  ;;  %v776_v56 = vpack.c.bf16 %v250_v55, %v249_v54  ;;  %v251_v57 = vld [vmem:[#allocation4 + $0x240] sm:$0xff]  ;;  %v856_v16 = vpack.c.bf16 %v458_v15, %v456_v0  ;;  %v460_v20 = vld [vmem:[#allocation4 + $0x788] sm:$0xff] }
  0x39   :  { %769 = vmatprep.subr.bf16.mxu0 %v975_v1  ;;  %v252_v58 = vld [vmem:[#allocation4 + $0x260] sm:$0xff]  ;;  %v462_v21 = vld [vmem:[#allocation4 + $0x7a8] sm:$0xff] }
  0x3a   :  { %v779_v59 = vpack.c.bf16 %v252_v58, %v251_v57  ;;  %v253_v60 = vld [vmem:[#allocation4 + $0x280] sm:$0xff]  ;;  %v860_v22 = vpack.c.bf16 %v462_v21, %v460_v20  ;;  %v464_v26 = vld [vmem:[#allocation4 + $0x7c8] sm:$0xff] }
  0x3b   :  { %755 = vmatpush1.bf16.msra.mxu1 %v754_v43  ;;  %v254_v61 = vld [vmem:[#allocation4 + $0x2a0] sm:$0xff]  ;;  %v466_v27 = vld [vmem:[#allocation4 + $0x7e8] sm:$0xff] }
  0x3c   :  { %757 = vmatprep.subr.bf16.mxu1 %v756_v44  ;;  %771 = vmatpush3.bf16.msra.mxu0 %v770_v50  ;;  %v782_v62 = vpack.c.bf16 %v254_v61, %v253_v60  ;;  %v447_v6 = vld [vmem:[#allocation4 + $0x6c0] sm:$0xff]  ;;  %v864_v28 = vpack.c.bf16 %v466_v27, %v464_v26  ;;  %v468_v32 = vld [vmem:[#allocation4 + $0x808] sm:$0xff] }
  0x3d   :  { %772 = vmatprep.subr.bf16.mxu0 %v975_v1  ;;  %v449_v7 = vld [vmem:[#allocation4 + $0x6e0] sm:$0xff]  ;;  %v472_v38 = vld [vmem:[#allocation4 + $0x848] sm:$0xff] }
  0x3e   :  { %v850_v9 = vpack.c.bf16 %v449_v7, %v447_v6  ;;  %v451_v12 = vld [vmem:[#allocation4 + $0x700] sm:$0xff]  ;;  %v474_v39 = vld [vmem:[#allocation4 + $0x868] sm:$0xff] }
  0x3f   :  { %759 = vmatpush1.bf16.msra.mxu1 %v758_v47  ;;  %v453_v13 = vld [vmem:[#allocation4 + $0x720] sm:$0xff]  ;;  %v872_v40 = vpack.c.bf16 %v474_v39, %v472_v38  ;;  %v476_v44 = vld [vmem:[#allocation4 + $0x888] sm:$0xff] }
  0x40   :  { %774 = vmatpush3.bf16.msra.mxu0 %v773_v53  ;;  %849 = vmatprep.subr.bf16.mxu1 %v848_v4  ;;  %v854_v14 = vpack.c.bf16 %v453_v13, %v451_v12  ;;  %v455_v17 = vld [vmem:[#allocation4 + $0x740] sm:$0xff]  ;;  %v478_v45 = vld [vmem:[#allocation4 + $0x8a8] sm:$0xff] }
  0x41   :  { %775 = vmatprep.subr.bf16.mxu0 %v975_v1  ;;  %v457_v18 = vld [vmem:[#allocation4 + $0x760] sm:$0xff]  ;;  %v876_v46 = vpack.c.bf16 %v478_v45, %v476_v44  ;;  %v480_v50 = vld [vmem:[#allocation4 + $0x8c8] sm:$0xff] }
  0x42   :  { %683 = vmatmul.mubr.msk.f32.vlgmr.msra.gmra.mrb[2].mxu1 %vm62_vm0, %v37_v33  ;;  %v858_v19 = vpack.c.bf16 %v457_v18, %v455_v17  ;;  %v459_v23 = vld [vmem:[#allocation4 + $0x780] sm:$0xff]  ;;  %v470_v33 = vld [vmem:[#allocation4 + $0x828] sm:$0xff] }
  0x43   :  { %851 = vmatpush1.bf16.msra.mxu1 %v850_v9  ;;  %v461_v24 = vld [vmem:[#allocation4 + $0x7a0] sm:$0xff]  ;;  %v868_v34 = vpack.c.bf16 %v470_v33, %v468_v32  ;;  %v482_v51 = vld [vmem:[#allocation4 + $0x8e8] sm:$0xff] }
  0x44   :  { %777 = vmatpush3.bf16.msra.mxu0 %v776_v56  ;;  %v862_v25 = vpack.c.bf16 %v461_v24, %v459_v23  ;;  %v463_v29 = vld [vmem:[#allocation4 + $0x7c0] sm:$0xff]  ;;  %v880_v52 = vpack.c.bf16 %v482_v51, %v480_v50  ;;  %v484_v56 = vld [vmem:[#allocation4 + $0x908] sm:$0xff] }
  0x45   :  { %778 = vmatprep.subr.bf16.mxu0 %v975_v1  ;;  %v465_v30 = vld [vmem:[#allocation4 + $0x7e0] sm:$0xff]  ;;  %v486_v57 = vld [vmem:[#allocation4 + $0x928] sm:$0xff] }
  0x46   :  { %v866_v31 = vpack.c.bf16 %v465_v30, %v463_v29  ;;  %v467_v35 = vld [vmem:[#allocation4 + $0x800] sm:$0xff]  ;;  %v884_v58 = vpack.c.bf16 %v486_v57, %v484_v56  ;;  %v490_v63 = vld [vmem:[#allocation4 + $0x968] sm:$0xff] }
  0x47   :  { %v469_v36 = vld [vmem:[#allocation4 + $0x820] sm:$0xff]  ;;  %v492_v6 = vld [vmem:[#allocation4 + $0x988] sm:$0xff] }
  0x48   :  { %780 = vmatpush3.bf16.msra.mxu0 %v779_v59  ;;  %v870_v37 = vpack.c.bf16 %v469_v36, %v467_v35  ;;  %v471_v41 = vld [vmem:[#allocation4 + $0x840] sm:$0xff]  ;;  %v494_v7 = vld [vmem:[#allocation4 + $0x9a8] sm:$0xff] }
  0x49   :  { %781 = vmatprep.subr.bf16.mxu0 %v975_v1  ;;  %v852_v1 = vpack.c.bf16 %v454_v11, %v452_v10  ;;  %v473_v42 = vld [vmem:[#allocation4 + $0x860] sm:$0xff]  ;;  %v498_v12 = vld [vmem:[#allocation4 + $0x9e8] sm:$0xff] }
  0x4a   :  { %v874_v43 = vpack.c.bf16 %v473_v42, %v471_v41  ;;  %v475_v47 = vld [vmem:[#allocation4 + $0x880] sm:$0xff]  ;;  %v502_v17 = vld [vmem:[#allocation4 + $0xa28] sm:$0xff] }
  0x4b   :  { %853 = vmatprep.subr.bf16.mxu1 %v852_v1  ;;  %v477_v48 = vld [vmem:[#allocation4 + $0x8a0] sm:$0xff]  ;;  %v496_v1 = vld [vmem:[#allocation4 + $0x9c8] sm:$0xff] }
  0x4c   :  { %783 = vmatpush3.bf16.msra.mxu0 %v782_v62  ;;  %855 = vmatpush1.bf16.msra.mxu1 %v854_v14  ;;  %v878_v49 = vpack.c.bf16 %v477_v48, %v475_v47  ;;  %v479_v53 = vld [vmem:[#allocation4 + $0x8c0] sm:$0xff]  ;;  %v488_v62 = vld [vmem:[#allocation4 + $0x948] sm:$0xff]  ;;  %v896_v13 = vpack.c.bf16 %v498_v12, %v496_v1 }
  0x4d   :  { %785 = vmatprep.subr.bf16.mxu0 %v784_v8  ;;  %857 = vmatprep.subr.bf16.mxu1 %v856_v16  ;;  %v481_v54 = vld [vmem:[#allocation4 + $0x8e0] sm:$0xff]  ;;  %v888_v2 = vpack.c.bf16 %v490_v63, %v488_v62  ;;  %v892_v8 = vpack.c.bf16 %v494_v7, %v492_v6  ;;  %v500_v16 = vld [vmem:[#allocation4 + $0xa08] sm:$0xff] }
  0x4e   :  { %v882_v55 = vpack.c.bf16 %v481_v54, %v479_v53  ;;  %v483_v59 = vld [vmem:[#allocation4 + $0x900] sm:$0xff]  ;;  %v900_v18 = vpack.c.bf16 %v502_v17, %v500_v16  ;;  %v388_v35 = vld [vmem:[#allocation4 + $0x308] sm:$0xff] }
  0x4f   :  { %v485_v60 = vld [vmem:[#allocation4 + $0x920] sm:$0xff]  ;;  %v390_v36 = vld [vmem:[#allocation4 + $0x328] sm:$0xff] }
  0x50   :  { %859 = vmatpush1.bf16.msra.mxu1 %v858_v19  ;;  %v886_v61 = vpack.c.bf16 %v485_v60, %v483_v59  ;;  %v487_v3 = vld [vmem:[#allocation4 + $0x940] sm:$0xff]  ;;  %v392_v47 = vld [vmem:[#allocation4 + $0x348] sm:$0xff] }
  0x51   :  { %861 = vmatprep.subr.bf16.mxu1 %v860_v22  ;;  %v489_v4 = vld [vmem:[#allocation4 + $0x960] sm:$0xff]  ;;  %v394_v48 = vld [vmem:[#allocation4 + $0x368] sm:$0xff] }
  0x52   :  { %v890_v5 = vpack.c.bf16 %v489_v4, %v487_v3  ;;  %v491_v9 = vld [vmem:[#allocation4 + $0x980] sm:$0xff]  ;;  %v792_v50 = vpack.c.bf16 %v394_v48, %v392_v47  ;;  %v396_v53 = vld [vmem:[#allocation4 + $0x388] sm:$0xff] }
  0x53   :  { %v493_v10 = vld [vmem:[#allocation4 + $0x9a0] sm:$0xff]  ;;  %v398_v54 = vld [vmem:[#allocation4 + $0x3a8] sm:$0xff] }
  0x54   :  { %863 = vmatpush1.bf16.msra.mxu1 %v862_v25  ;;  %v894_v11 = vpack.c.bf16 %v493_v10, %v491_v9  ;;  %v495_v14 = vld [vmem:[#allocation4 + $0x9c0] sm:$0xff]  ;;  %v796_v56 = vpack.c.bf16 %v398_v54, %v396_v53  ;;  %v400_v59 = vld [vmem:[#allocation4 + $0x3c8] sm:$0xff] }
  0x55   :  { %865 = vmatprep.subr.bf16.mxu1 %v864_v28  ;;  %v497_v0 = vld [vmem:[#allocation4 + $0x9e0] sm:$0xff]  ;;  %v402_v60 = vld [vmem:[#allocation4 + $0x3e8] sm:$0xff] }
  0x56   :  { %v898_v15 = vpack.c.bf16 %v497_v0, %v495_v14  ;;  %v383_v32 = vld [vmem:[#allocation4 + $0x2c0] sm:$0xff]  ;;  %v800_v62 = vpack.c.bf16 %v402_v60, %v400_v59  ;;  %v404_v3 = vld [vmem:[#allocation4 + $0x408] sm:$0xff] }
  0x57   :  { %v385_v33 = vld [vmem:[#allocation4 + $0x2e0] sm:$0xff]  ;;  %v406_v4 = vld [vmem:[#allocation4 + $0x428] sm:$0xff] }
  0x58   :  { %867 = vmatpush1.bf16.msra.mxu1 %v866_v31  ;;  %v786_v41 = vpack.c.bf16 %v385_v33, %v383_v32  ;;  %v387_v44 = vld [vmem:[#allocation4 + $0x300] sm:$0xff]  ;;  %v804_v6 = vpack.c.bf16 %v406_v4, %v404_v3  ;;  %v408_v9 = vld [vmem:[#allocation4 + $0x448] sm:$0xff] }
  0x59   :  { %869 = vmatprep.subr.bf16.mxu1 %v868_v34  ;;  %v389_v45 = vld [vmem:[#allocation4 + $0x320] sm:$0xff]  ;;  %v410_v10 = vld [vmem:[#allocation4 + $0x468] sm:$0xff] }
  0x5a   :  { %v391_v51 = vld [vmem:[#allocation4 + $0x340] sm:$0xff]  ;;  %v808_v1 = vpack.c.bf16 %v410_v10, %v408_v9  ;;  %v412_v14 = vld [vmem:[#allocation4 + $0x488] sm:$0xff] }
  0x5b   :  { %v395_v57 = vld [vmem:[#allocation4 + $0x380] sm:$0xff]  ;;  %v414_v0 = vld [vmem:[#allocation4 + $0x4a8] sm:$0xff] }
  0x5c   :  { %871 = vmatpush1.bf16.msra.mxu1 %v870_v37  ;;  %v399_v63 = vld [vmem:[#allocation4 + $0x3c0] sm:$0xff]  ;;  %v812_v16 = vpack.c.bf16 %v414_v0, %v412_v14  ;;  %v434_v47 = vld [vmem:[#allocation4 + $0x5e8] sm:$0xff] }
  0x5d   :  { %873 = vmatprep.subr.bf16.mxu1 %v872_v40  ;;  %v403_v7 = vld [vmem:[#allocation4 + $0x400] sm:$0xff]  ;;  %v436_v53 = vld [vmem:[#allocation4 + $0x608] sm:$0xff] }
  0x5e   :  { %v407_v12 = vld [vmem:[#allocation4 + $0x440] sm:$0xff]  ;;  %v438_v54 = vld [vmem:[#allocation4 + $0x628] sm:$0xff] }
  0x5f   :  { %v411_v17 = vld [vmem:[#allocation4 + $0x480] sm:$0xff]  ;;  %v442_v4 = vld [vmem:[#allocation4 + $0x668] sm:$0xff] }
  0x60   :  { %875 = vmatpush1.bf16.msra.mxu1 %v874_v43  ;;  %v788_v43 = vpack.c.bf16 %v390_v36, %v388_v35  ;;  %v419_v32 = vld [vmem:[#allocation4 + $0x500] sm:$0xff]  ;;  %v426_v35 = vld [vmem:[#allocation4 + $0x568] sm:$0xff] }
  0x61   :  { %877 = vmatprep.subr.bf16.mxu1 %v876_v46  ;;  %v421_v33 = vld [vmem:[#allocation4 + $0x520] sm:$0xff]  ;;  %v446_v14 = vld [vmem:[#allocation4 + $0x6a8] sm:$0xff] }
  0x62   :  { %v822_v36 = vpack.c.bf16 %v421_v33, %v419_v32  ;;  %v437_v59 = vld [vmem:[#allocation4 + $0x620] sm:$0xff] }
  0x63   :  { %v439_v9 = vld [vmem:[#allocation4 + $0x640] sm:$0xff] }
  0x64   :  { %879 = vmatpush1.bf16.msra.mxu1 %v878_v49  ;;  %v790_v49 = vpack.c.bf16 %v389_v45, %v387_v44  ;;  %v427_v44 = vld [vmem:[#allocation4 + $0x580] sm:$0xff] }
  0x65   :  { %881 = vmatprep.subr.bf16.mxu1 %v880_v52  ;;  %v393_v52 = vld [vmem:[#allocation4 + $0x360] sm:$0xff] }
  0x66   :  { %v429_v45 = vld [vmem:[#allocation4 + $0x5a0] sm:$0xff] }
  0x67   :  { %v830_v48 = vpack.c.bf16 %v429_v45, %v427_v44  ;;  %v441_v10 = vld [vmem:[#allocation4 + $0x660] sm:$0xff] }
  0x68   :  { %883 = vmatpush1.bf16.msra.mxu1 %v882_v55  ;;  %v794_v55 = vpack.c.bf16 %v393_v52, %v391_v51  ;;  %v433_v51 = vld [vmem:[#allocation4 + $0x5e0] sm:$0xff] }
  0x69   :  { %885 = vmatprep.subr.bf16.mxu1 %v884_v58  ;;  %v397_v58 = vld [vmem:[#allocation4 + $0x3a0] sm:$0xff] }
  0x6c   :  { %887 = vmatpush1.bf16.msra.mxu1 %v886_v61  ;;  %v798_v61 = vpack.c.bf16 %v397_v58, %v395_v57  ;;  %v501_v57 = vld [vmem:[#allocation4 + $0xa20] sm:$0xff] }
  0x6d   :  { %889 = vmatprep.subr.bf16.mxu1 %v888_v2  ;;  %v401_v2 = vld [vmem:[#allocation4 + $0x3e0] sm:$0xff] }
  0x6e   :  { %v435_v58 = vld [vmem:[#allocation4 + $0x600] sm:$0xff] }
  0x70   :  { %891 = vmatpush1.bf16.msra.mxu1 %v890_v5  ;;  %v802_v5 = vpack.c.bf16 %v401_v2, %v399_v63  ;;  %v506_v63 = vld [vmem:[#allocation4 + $0xa68] sm:$0xff] }
  0x71   :  { %893 = vmatprep.subr.bf16.mxu1 %v892_v8  ;;  %v405_v8 = vld [vmem:[#allocation4 + $0x420] sm:$0xff]  ;;  %v440_v2 = vld [vmem:[#allocation4 + $0x648] sm:$0xff] }
  0x74   :  { %895 = vmatpush1.bf16.msra.mxu1 %v894_v11  ;;  %v806_v11 = vpack.c.bf16 %v405_v8, %v403_v7  ;;  %v840_v7 = vpack.c.bf16 %v442_v4, %v440_v2 }
  0x75   :  { %897 = vmatprep.subr.bf16.mxu1 %v896_v13  ;;  %v409_v13 = vld [vmem:[#allocation4 + $0x460] sm:$0xff] }
  0x78   :  { %899 = vmatpush1.bf16.msra.mxu1 %v898_v15  ;;  %v810_v15 = vpack.c.bf16 %v409_v13, %v407_v12  ;;  %v510_v12 = vld [vmem:[#allocation4 + $0xaa8] sm:$0xff] }
  0x79   :  { %901 = vmatprep.subr.bf16.mxu1 %v900_v18  ;;  %v413_v18 = vld [vmem:[#allocation4 + $0x4a0] sm:$0xff]  ;;  %v444_v13 = vld [vmem:[#allocation4 + $0x688] sm:$0xff] }
 0x109   :  { %v1037_v19 = vpop.f32.mrb[0].mxu1 }
 0x10a   :  { %v1039_v20 = vpop.f32.mrb[1].mxu1  ;;  %v208_v22 = vmul.f32 %v1037_v19, %v1037_v19 }
 0x10b   :  { %v209_v21 = vmul.f32 %v1039_v20, %v1037_v19  ;;  %v211_v26 = vmul.f32 %v1039_v20, %v1039_v20 }
 0x10d   :  { %v215_v23 = vrot.slane %v209_v21, 7  ;;  %v221_v34 = vrot.slane %v211_v26, 5  ;;  %v416_v21 = vld [vmem:[#allocation4 + $0x4c8] sm:$0xff]  ;;  %v415_v26 = vld [vmem:[#allocation4 + $0x4c0] sm:$0xff] }
 0x10f   :  { %v230_v24 = vsel %vm229_vm2, %v208_v22, %v215_v23  ;;  %v418_v22 = vld [vmem:[#allocation4 + $0x4e8] sm:$0xff]  ;;  %v814_v23 = vpack.c.bf16 %v413_v18, %v411_v17  ;;  %v509_v17 = vld [vmem:[#allocation4 + $0xaa0] sm:$0xff] }
 0x110   :  { %v443_v18 = vld [vmem:[#allocation4 + $0x680] sm:$0xff] }
 0x115   :  { %v1045_v25 = vpop.f32.mrb[2].mxu1 }
 0x116   :  { %v210_v27 = vmul.f32 %v1045_v25, %v1037_v19  ;;  %v205_v28 = vpop.f32.mrb[3].mxu1  ;;  %v212_v29 = vmul.f32 %v1045_v25, %v1039_v20  ;;  %v213_v30 = vmul.f32 %v1045_v25, %v1045_v25  ;;  %v370_v32 = vrot.slane %v1045_v25, 3 }
 0x117   :  { %646 = vmatprep.mubr.f32.mxu1 %v205_v28  ;;  %v420_v28 = vld [vmem:[#allocation4 + $0x508] sm:$0xff] }
 0x118   :  { %v218_v31 = vrot.slane %v210_v27, 6  ;;  %v224_v37 = vrot.slane %v212_v29, 4  ;;  %v227_v39 = vrot.slane %v213_v30, 3  ;;  %v417_v27 = vld [vmem:[#allocation4 + $0x4e0] sm:$0xff]  ;;  %v422_v29 = vld [vmem:[#allocation4 + $0x528] sm:$0xff] }
 0x119   :  { %v818_v30 = vpack.c.bf16 %v417_v27, %v415_v26  ;;  %v343_v26 = vrot.slane %v1037_v19, 7  ;;  %v346_v27 = vrot.slane %v1039_v20, 5 }
 0x11a   :  { %v232_v38 = vsel %vm231_vm3, %v230_v24, %v218_v31  ;;  %v816_v24 = vpack.c.bf16 %v418_v22, %v416_v21  ;;  %v820_v31 = vpack.c.bf16 %v422_v29, %v420_v28  ;;  %v445_v22 = vld [vmem:[#allocation4 + $0x6a0] sm:$0xff]  ;;  %v353_v28 = vrot.slane %v1045_v25, 4 }
 0x11b   :  { %v234_v40 = vsel %vm233_vm4, %v232_v38, %v221_v34  ;;  %v424_v34 = vld [vmem:[#allocation4 + $0x548] sm:$0xff]  ;;  %v423_v38 = vld [vmem:[#allocation4 + $0x540] sm:$0xff]  ;;  %v327_v29 = vrot.slane %v1039_v20, 7 }
 0x11c   :  { %v236_v42 = vsel %vm235_vm5, %v234_v40, %v224_v37  ;;  %v824_v37 = vpack.c.bf16 %v426_v35, %v424_v34  ;;  %v428_v40 = vld [vmem:[#allocation4 + $0x588] sm:$0xff] }
 0x11d   :  { %v238_v46 = vsel %vm237_vm6, %v236_v42, %v227_v39  ;;  %v425_v39 = vld [vmem:[#allocation4 + $0x560] sm:$0xff] }
 0x11e   :  { %734 = vmatmul.mubr.f32.vlgmr.msra.gmra.mrb[0].mxu0 %v238_v46  ;;  %v826_v42 = vpack.c.bf16 %v425_v39, %v423_v38  ;;  %v432_v46 = vld [vmem:[#allocation4 + $0x5c8] sm:$0xff] }
 0x11f   :  { %787 = vmatpush1.bf16.msra.mxu0 %v786_v41  ;;  %v430_v41 = vld [vmem:[#allocation4 + $0x5a8] sm:$0xff] }
 0x120   :  { %789 = vmatprep.subr.bf16.mxu0 %v788_v43  ;;  %v828_v43 = vpack.c.bf16 %v430_v41, %v428_v40 }
 0x123   :  { %791 = vmatpush1.bf16.msra.mxu0 %v790_v49  ;;  %v832_v49 = vpack.c.bf16 %v434_v47, %v432_v46 }
 0x124   :  { %793 = vmatprep.subr.bf16.mxu0 %v792_v50  ;;  %v431_v50 = vld [vmem:[#allocation4 + $0x5c0] sm:$0xff] }
 0x125   :  { %v834_v52 = vpack.c.bf16 %v433_v51, %v431_v50 }
 0x127   :  { %795 = vmatpush1.bf16.msra.mxu0 %v794_v55  ;;  %v499_v55 = vld [vmem:[#allocation4 + $0xa00] sm:$0xff] }
 0x128   :  { %797 = vmatprep.subr.bf16.mxu0 %v796_v56  ;;  %v836_v56 = vpack.c.bf16 %v438_v54, %v436_v53  ;;  %v902_v60 = vpack.c.bf16 %v501_v57, %v499_v55  ;;  %v659_v57 = vlaneseq }
 0x12a   :  { %903 = vmatpush1.bf16.msra.mxu1 %v902_v60  ;;  %vm673_vm7 = vcmp.lt.s32.totalorder %v659_v57, 256 }
 0x12b   :  { %799 = vmatpush1.bf16.msra.mxu0 %v798_v61  ;;  %v838_v61 = vpack.c.bf16 %v437_v59, %v435_v58  ;;  %v660_v59 = vshrl.u32 %v659_v57, 7 }
 0x12c   :  { %801 = vmatprep.subr.bf16.mxu0 %v800_v62  ;;  %v504_v62 = vld [vmem:[#allocation4 + $0xa48] sm:$0xff] }
 0x12d   :  { %v904_v3 = vpack.c.bf16 %v506_v63, %v504_v62 }
 0x12f   :  { %803 = vmatpush1.bf16.msra.mxu0 %v802_v5  ;;  %v503_v5 = vld [vmem:[#allocation4 + $0xa40] sm:$0xff]  ;;  %905 = vmatprep.subr.bf16.mxu1 %v904_v3 }
 0x130   :  { %805 = vmatprep.subr.bf16.mxu0 %v804_v6  ;;  %v505_v6 = vld [vmem:[#allocation4 + $0xa60] sm:$0xff] }
 0x131   :  { %v906_v8 = vpack.c.bf16 %v505_v6, %v503_v5 }
 0x133   :  { %807 = vmatpush1.bf16.msra.mxu0 %v806_v11  ;;  %v508_v11 = vld [vmem:[#allocation4 + $0xa88] sm:$0xff]  ;;  %907 = vmatpush1.bf16.msra.mxu1 %v906_v8 }
 0x134   :  { %809 = vmatprep.subr.bf16.mxu0 %v808_v1  ;;  %v842_v1 = vpack.c.bf16 %v441_v10, %v439_v9  ;;  %v908_v0 = vpack.c.bf16 %v510_v12, %v508_v11 }
 0x136   :  { %909 = vmatprep.subr.bf16.mxu1 %v908_v0 }
 0x137   :  { %811 = vmatpush1.bf16.msra.mxu0 %v810_v15  ;;  %v844_v15 = vpack.c.bf16 %v446_v14, %v444_v13 }
 0x138   :  { %813 = vmatprep.subr.bf16.mxu0 %v812_v16  ;;  %v507_v16 = vld [vmem:[#allocation4 + $0xa80] sm:$0xff] }
 0x139   :  { %v910_v21 = vpack.c.bf16 %v509_v17, %v507_v16 }
 0x13b   :  { %815 = vmatpush1.bf16.msra.mxu0 %v814_v23  ;;  %v846_v23 = vpack.c.bf16 %v445_v22, %v443_v18  ;;  %911 = vmatpush1.bf16.msra.mxu1 %v910_v21 }
 0x13c   :  { %817 = vmatprep.subr.bf16.mxu0 %v816_v24  ;;  %v360_v24 = vrot.slane %v1037_v19, 6 }
 0x13f   :  { %819 = vmatpush1.bf16.msra.mxu0 %v818_v30  ;;  %v363_v30 = vrot.slane %v1039_v20, 4 }
 0x140   :  { %821 = vmatprep.subr.bf16.mxu0 %v820_v31  ;;  %v335_v31 = vrot.slane %v1045_v25, 6 }
 0x143   :  { %823 = vmatpush1.bf16.msra.mxu0 %v822_v36 }
 0x144   :  { %825 = vmatprep.subr.bf16.mxu0 %v824_v37 }
 0x147   :  { %827 = vmatpush1.bf16.msra.mxu0 %v826_v42 }
 0x148   :  { %829 = vmatprep.subr.bf16.mxu0 %v828_v43 }
 0x14b   :  { %831 = vmatpush1.bf16.msra.mxu0 %v830_v48 }
 0x14c   :  { %833 = vmatprep.subr.bf16.mxu0 %v832_v49 }
 0x14f   :  { %835 = vmatpush1.bf16.msra.mxu0 %v834_v52 }
 0x150   :  { %837 = vmatprep.subr.bf16.mxu0 %v836_v56 }
 0x153   :  { %839 = vmatpush1.bf16.msra.mxu0 %v838_v61 }
 0x154   :  { %841 = vmatprep.subr.bf16.mxu0 %v840_v7 }
 0x157   :  { %843 = vmatpush1.bf16.msra.mxu0 %v842_v1 }
 0x158   :  { %845 = vmatprep.subr.bf16.mxu0 %v844_v15 }
 0x15b   :  { %847 = vmatpush1.bf16.msra.mxu0 %v846_v23 }
 0x1f1   :  { %v321_v33 = vpop.f32.mrb[0].mxu0 }
 0x1f2   :  { %v735_v34 = vpop.f32.mrb[1].mxu0  ;;  %v345_v35 = vmul.f32 %v343_v26, %v321_v33  ;;  %v348_v36 = vmul.f32 %v346_v27, %v321_v33  ;;  %v355_v37 = vmul.f32 %v353_v28, %v321_v33  ;;  %v362_v38 = vmul.f32 %v360_v24, %v321_v33 }
 0x1f3   :  { %v365_v39 = vmul.f32 %v363_v30, %v321_v33  ;;  %v372_v40 = vmul.f32 %v370_v32, %v321_v33  ;;  %v325_v41 = vmul.f32 %v321_v33, %v1037_v19  ;;  %v329_v42 = vmul.f32 %v327_v29, %v321_v33 }
 0x1f4   :  { %v350_v43 = vrot.slane %v348_v36, 2  ;;  %v337_v44 = vmul.f32 %v335_v31, %v321_v33  ;;  %v357_v47 = vrot.slane %v355_v37, 3  ;;  %v977_v19 = vmov 1966171168  }
 0x1f5   :  { %v367_v45 = vrot.slane %v365_v39, 2  ;;  %v331_v46 = vrot.slane %v329_v42, 1  ;;  %v374_v49 = vrot.slane %v372_v40, 3  ;;  %v657_v56 = vunpack.c.l.s4 %v977_v19 }
 0x1f6   :  { %v352_v20 = vadd.f32 %v350_v43, %v345_v35  ;;  %v339_v50 = vrot.slane %v337_v44, 2 }
 0x1f7   :  { %v369_v48 = vadd.f32 %v367_v45, %v362_v38  ;;  %v333_v25 = vadd.f32 %v331_v46, %v325_v41  ;;  %v658_v58 = vunpack.c.0.s8 %v657_v56 }
 0x1f8   :  { %v359_v51 = vadd.f32 %v357_v47, %v352_v20 }
 0x1f9   :  { %v376_v52 = vadd.f32 %v374_v49, %v369_v48  ;;  %v341_v53 = vadd.f32 %v339_v50, %v333_v25  ;;  %v661_v4 = vsub.s32 %v658_v58, %v660_v59 }
 0x1fa   :  { %v378_v54 = vrot.slane %v359_v51, 1 }
 0x1fb   :  { %v381_v55 = vrot.slane %v376_v52, 2 }
 0x1fc   :  { %575 = vmatprep.mubr.f32.mxu0 %v378_v54 }
 0x1fd   :  { %647 = vmatmul.mubr.f32.vlgmr.msra.gmra.mrb[4].mxu1 %v381_v55  ;;  %576 = vmatmul.mubr.f32.vlgmr.msra.gmra.mrb[2].mxu0 %v341_v53 }
 0x2d0   :  { %v648_v60 = vpop.f32.mrb[4].mxu1  ;;  %v577_v61 = vpop.f32.mrb[2].mxu0 }
 0x2d1   :  { %v649_v62 = vadd.f32 %v648_v60, %v577_v61  ;;  %v650_v63 = vpop.f32.mrb[5].mxu1  ;;  %v579_v2 = vpop.f32.mrb[3].mxu0 }
 0x2d2   :  { %v651_v3 = vadd.f32 %v650_v63, %v579_v2 }
 0x2d4   :  { %v655_v5 = vcombine.low %v649_v62, %v651_v3 }
 0x2d6   :  { %v662_v6 = vrot.slane %v655_v5, %v661_v4 }
 0x2d8   :  { %v669_v7 = vrot.slane %v662_v6, %v661_v4 }
 0x2da   :  { %675 = vst.msk [vmem:[%s1069_s2] sm:$0x3] %vm673_vm7, %v669_v7 }
 0x2db   :  { %680 = vsyncpa [#allocation3], 1 }
 0x2dc   :  { %681 = vsyncpa [#allocation5], 1 }

</bundles_post_ra>
